<compile_context>
chip_gen: v7x
topology: tpu7x:2x2x1
jax: 0.10.0
libtpu: 0.0.40
codegen_flags: <defaults>
</compile_context>

<pallas_src>
import math

import numpy as np
import jax
import jax.numpy as jnp
from jax.experimental import pallas as pl
from jax.experimental.pallas import tpu as pltpu

NEG_BIG = -9.0e15


def semgcn_kernel(x_ref, t_ref, bias_ref, o_ref):
    # x_ref:    (BT, J*Cin)   flattened joint features for a batch tile
    # t_ref:    (J*Cin, NT)   column tile of the fused (adjacency x weights) operator
    # bias_ref: (1, NT)       bias tiled over joints (f32)
    # o_ref:    (BT, NT)
    o_ref[...] = (
        jnp.dot(x_ref[...], t_ref[...], preferred_element_type=jnp.float32)
        + bias_ref[...]
    ).astype(o_ref.dtype)


def _batch_tiling(B, sublane, bt_max=1024):
    """Minimal-padding batch tiles: nb = ceil(B / bt_max) tiles of
    BT = round_up(ceil(B / nb), sublane) rows each."""
    nb = max(1, -(-B // bt_max))
    bt = -(-B // nb)                      # ceil(B / nb)
    bt = -(-bt // sublane) * sublane      # round up to sublane multiple
    return bt, nb, bt * nb


def _column_tiling(N, n_batch_tiles, t_row_bytes):
    """Number of lane-dense (multiple-of-128) column tiles of the (K, N) fused
    operator.  Guarantees >=2 total grid steps (v7x megacore) when the batch
    collapses to one tile, and bounds the per-step T VMEM footprint."""
    if N % 128 != 0:
        return 1                          # full-extent block is always legal
    lanes = N // 128
    divisors = [d for d in range(1, lanes + 1) if lanes % d == 0]
    want_min = 2 if (n_batch_tiles == 1 and lanes >= 2) else 1
    t_bytes = t_row_bytes * N
    budget = 8 << 20                      # per-tile T budget (Pallas double-buffers)
    for d in divisors:
        if d >= want_min and t_bytes // d <= budget:
            return d
    return divisors[-1]


def build_fused_operator(W, adj_logits, bias, compute_dtype=jnp.bfloat16):
    """Batch-invariant preprocessing — build once, reuse across forward calls.
    Softmax of the adjacency logits is done in float32 (NEG_BIG saturates bf16)."""
    _, Cin, Cout = W.shape
    J = adj_logits.shape[0]
    adj_sm = jax.nn.softmax(adj_logits.astype(jnp.float32), axis=1)
    eye = jnp.eye(J, dtype=jnp.float32)
    a_diag = adj_sm * eye                 # pairs with W[0]
    a_off = adj_sm * (1.0 - eye)          # pairs with W[1]
    W32 = W.astype(jnp.float32)
    # T[(k,c),(j,o)] = a_diag[j,k]*W0[c,o] + a_off[j,k]*W1[c,o]
    T = (jnp.einsum('jk,co->kcjo', a_diag, W32[0])
         + jnp.einsum('jk,co->kcjo', a_off, W32[1]))
    T_mat = T.reshape(J * Cin, J * Cout).astype(compute_dtype)
    bias_wide = jnp.tile(bias.astype(jnp.float32), J).reshape(1, J * Cout)
    return T_mat, bias_wide


def sem_graph_conv_fused(x, T_mat, bias_wide, cout, out_dtype=None, bt_max=1024):
    """x: (B, J, Cin); T_mat: (J*Cin, J*Cout) in the compute dtype;
    bias_wide: (1, J*Cout) f32."""
    B, J, Cin = x.shape
    K = J * Cin
    N = T_mat.shape[1]
    assert T_mat.shape[0] == K and bias_wide.shape == (1, N) and N == J * cout

    compute_dtype = T_mat.dtype
    out_dtype = x.dtype if out_dtype is None else out_dtype
    itemsize = jnp.dtype(compute_dtype).itemsize
    out_itemsize = jnp.dtype(out_dtype).itemsize
    sublane = max(8, 32 // itemsize, 32 // out_itemsize)

    BT, nb, B_pad = _batch_tiling(B, sublane, bt_max)
    nc = _column_tiling(N, nb, K * itemsize)
    NT = N // nc

    x_flat = x.reshape(B, K).astype(compute_dtype)
    if B_pad != B:
        x_flat = jnp.pad(x_flat, ((0, B_pad - B), (0, 0)))

    # VMEM footprint guard (Pallas double-buffers every block by default).
    vmem_bytes = 2 * (BT * K * itemsize + BT * NT * out_itemsize
                      + K * NT * itemsize + NT * 4)
    compiler_kwargs = dict(dimension_semantics=("parallel", "parallel"))
    if vmem_bytes > 28 * 1024 * 1024:
        compiler_kwargs["vmem_limit_bytes"] = min(
            int(vmem_bytes * 1.25), 60 * 1024 * 1024)

    cost = pl.CostEstimate(
        flops=2 * B_pad * K * N,
        transcendentals=0,
        bytes_accessed=(B_pad * K * itemsize          # x read
                        + nb * K * N * itemsize       # fused T re-fetch per batch tile
                        + N * 4                       # bias
                        + B_pad * N * out_itemsize),  # output writeback
    )

    out_flat = pl.pallas_call(
        semgcn_kernel,
        out_shape=jax.ShapeDtypeStruct((B_pad, N), out_dtype),
        grid_spec=pltpu.PrefetchScalarGridSpec(
            num_scalar_prefetch=0,
            grid=(nb, nc),
            in_specs=[
                pl.BlockSpec((BT, K), lambda b, n: (b, 0)),   # x batch tile
                pl.BlockSpec((K, NT), lambda b, n: (0, n)),   # fused T column tile
                pl.BlockSpec((1, NT), lambda b, n: (0, n)),   # bias column tile
            ],
            out_specs=pl.BlockSpec((BT, NT), lambda b, n: (b, n)),
        ),
        compiler_params=pltpu.CompilerParams(**compiler_kwargs),
        cost_estimate=cost,
    )(x_flat, T_mat, bias_wide)

    return out_flat[:B].reshape(B, J, cout)


def sem_graph_conv(x, W, adj_logits, bias, compute_dtype=jnp.bfloat16,
                   out_dtype=None):
    """Convenience wrapper (rebuilds the fused operator every call; prefer
    build_fused_operator + sem_graph_conv_fused when W/adj are static)."""
    T_mat, bias_wide = build_fused_operator(W, adj_logits, bias, compute_dtype)
    return sem_graph_conv_fused(x, T_mat, bias_wide, W.shape[2],
                                out_dtype=out_dtype)


if __name__ == "__main__":
    B, J, Cin, Cout = 2, 16, 4, 32

    key = jax.random.PRNGKey(0)
    k_w, k_b, k_x, k_x2 = jax.random.split(key, 4)

    # ---- static adjacency (chain over J joints + self loops), glued in numpy ----
    adj_np = np.zeros((J, J), np.float32)
    for i in range(J - 1):
        adj_np[i, i + 1] = 1.0
        adj_np[i + 1, i] = 1.0
    np.fill_diagonal(adj_np, 1.0)
    mask = adj_np > 0
    nnz = int(mask.sum())

    # e = nn.Parameter(zeros(1, nnz)); nn.init.constant_(e, 1)
    e = np.ones((1, nnz), np.float32)
    adj_logits_np = np.full((J, J), NEG_BIG, np.float32)
    adj_logits_np[np.nonzero(mask)] = e.reshape(-1)   # row-major scatter == adj[m] = e
    adj_logits = jnp.asarray(adj_logits_np)

    # ---- deterministic parameter init (matches the module's shapes / init style) ----
    gain = 1.414
    fan_in = Cin * Cout      # torch fan computation for 3-D tensors
    fan_out = 2 * Cout
    bound = gain * math.sqrt(6.0 / (fan_in + fan_out))
    W = jax.random.uniform(k_w, (2, Cin, Cout), jnp.float32, -bound, bound)

    stdv = 1.0 / math.sqrt(Cout)
    bias = jax.random.uniform(k_b, (Cout,), jnp.float32, -stdv, stdv)

    # ---- pure-JAX reference (exact transcription of the torch forward) ----
    def reference(xx):
        adj_sm = jax.nn.softmax(adj_logits, axis=1)
        M = jnp.eye(J, dtype=jnp.float32)
        h0 = xx @ W[0]
        h1 = xx @ W[1]
        return (adj_sm * M) @ h0 + (adj_sm * (1.0 - M)) @ h1 + bias[None, None, :]

    # ---- hoist the batch-invariant fusion once per compute dtype, reuse below ----
    T_bf16, bias_wide = build_fused_operator(W, adj_logits, bias, jnp.bfloat16)
    T_f32, _ = build_fused_operator(W, adj_logits, bias, jnp.float32)

    # ---- small batch (single padded tile, 2 column tiles for v7x) ----
    x = jax.random.normal(k_x, (B, J, Cin), jnp.float32)
    ref = np.asarray(reference(x))

    out_bf16 = jax.block_until_ready(sem_graph_conv_fused(x, T_bf16, bias_wide, Cout))
    np.testing.assert_allclose(np.asarray(out_bf16), ref, rtol=3e-2, atol=3e-2)

    out_f32 = jax.block_until_ready(sem_graph_conv_fused(x, T_f32, bias_wide, Cout))
    np.testing.assert_allclose(np.asarray(out_f32), ref, rtol=1e-4, atol=1e-4)

    # ---- larger batch: minimal padding (B=300 -> one 304-row tile, not 2x256) ----
    B2 = 300
    x2 = jax.random.normal(k_x2, (B2, J, Cin), jnp.float32)
    ref2 = np.asarray(reference(x2))

    out2_bf16 = jax.block_until_ready(sem_graph_conv_fused(x2, T_bf16, bias_wide, Cout))
    np.testing.assert_allclose(np.asarray(out2_bf16), ref2, rtol=3e-2, atol=3e-2)

    out2_f32 = jax.block_until_ready(sem_graph_conv_fused(x2, T_f32, bias_wide, Cout))
    np.testing.assert_allclose(np.asarray(out2_f32), ref2, rtol=1e-4, atol=1e-4)

    print("KERNEL_OK")
</pallas_src>

<mosaic_0001>
module attributes {stable_mosaic.version = 11 : i64} {
  func.func @semgcn_kernel(%arg0: i32, %arg1: i32, %arg2: memref<16x64xbf16, #tpu.memory_space<vmem>>, %arg3: memref<64x256xbf16, #tpu.memory_space<vmem>>, %arg4: memref<1x256xf32, #tpu.memory_space<vmem>>, %arg5: memref<16x256xf32, #tpu.memory_space<vmem>>) attributes {dimension_semantics = [#tpu.dimension_semantics<parallel>, #tpu.dimension_semantics<parallel>], iteration_bounds = array<i64: 1, 2>, scalar_prefetch = 0 : i64, scratch_operands = 0 : i64, tpu.core_type = #tpu.core_type<tc>, window_params = [{transform_indices = @transform_0, window_bounds = array<i64: 16, 64>}, {transform_indices = @transform_1, window_bounds = array<i64: 64, 256>}, {transform_indices = @transform_2, window_bounds = array<i64: 1, 256>}, {transform_indices = @transform_3, window_bounds = array<i64: 16, 256>}]} {
    %c0 = arith.constant 0 : index
    %c0_0 = arith.constant 0 : index
    %0 = vector.load %arg2[%c0, %c0_0] : memref<16x64xbf16, #tpu.memory_space<vmem>>, vector<16x64xbf16>
    %c0_1 = arith.constant 0 : index
    %c0_2 = arith.constant 0 : index
    %1 = vector.load %arg3[%c0_1, %c0_2] : memref<64x256xbf16, #tpu.memory_space<vmem>>, vector<64x256xbf16>
    %cst = arith.constant dense<0.000000e+00> : vector<16x256xf32>
    %2 = tpu.matmul %0, %1, %cst {dimension_numbers = #tpu.dot_dimension_numbers<[1], [0], [0], [1], [0, 0, 1, 1], [], []>} : vector<16x64xbf16>, vector<64x256xbf16>, vector<16x256xf32> -> vector<16x256xf32>
    %c0_3 = arith.constant 0 : index
    %c0_4 = arith.constant 0 : index
    %3 = vector.load %arg4[%c0_3, %c0_4] : memref<1x256xf32, #tpu.memory_space<vmem>>, vector<1x256xf32>
    %4 = vector.broadcast %3 : vector<1x256xf32> to vector<16x256xf32>
    %5 = arith.addf %2, %4 : vector<16x256xf32>
    %c0_5 = arith.constant 0 : index
    %c0_6 = arith.constant 0 : index
    %6 = vector.load %arg5[%c0_5, %c0_6] : memref<16x256xf32, #tpu.memory_space<vmem>>, vector<16x256xf32>
    tpu.vector_store %arg5[%c0_5, %c0_6], %5 {strides = array<i32>} : memref<16x256xf32, #tpu.memory_space<vmem>>, vector<16x256xf32>,
    return
  }
  func.func @transform_0(%arg0: i32, %arg1: i32) -> (i32, i32) {
    %c0_i32 = arith.constant 0 : i32
    %c0_i32_0 = arith.constant 0 : i32
    return %arg0, %c0_i32 : i32, i32
  }
  func.func @transform_1(%arg0: i32, %arg1: i32) -> (i32, i32) {
    %c0_i32 = arith.constant 0 : i32
    %c0_i32_0 = arith.constant 0 : i32
    return %c0_i32, %arg1 : i32, i32
  }
  func.func @transform_2(%arg0: i32, %arg1: i32) -> (i32, i32) {
    %c0_i32 = arith.constant 0 : i32
    %c0_i32_0 = arith.constant 0 : i32
    return %c0_i32, %arg1 : i32, i32
  }
  func.func @transform_3(%arg0: i32, %arg1: i32) -> (i32, i32) {
    %c0_i32 = arith.constant 0 : i32
    return %arg0, %arg1 : i32, i32
  }
}

</mosaic_0001>

<bundles_post_ra>
// kernel: tpu_custom_call.1
= control target key start
LH: loop header
LB: loop body
LE: loop exit
PB: predicated region body
PF: predicated region fallthrough
CT: control target
= control target key end

     0   :  { %8 = vsyncpa [#allocation3], 0  ;;  %s1020_s0 = inlined_call_operand.hbm [shape: bf16[16,64], index: 0, kind: input, shape index: {}]   ;;  %s1021_s1 = inlined_call_operand.hbm [shape: bf16[64,512], index: 1, kind: input, shape index: {}]   ;;  %s1022_s2 = inlined_call_operand.vmem [shape: f32[1,512], index: 2, kind: input, shape index: {}]   ;;  %s1023_s3 = inlined_call_operand.hbm [shape: f32[16,512], index: 3, kind: output, shape index: {}]  }
   0x1   :  { %9 = vsyncpa [#allocation6], 0 }
   0x2   :  { %11 = vsyncpa [#allocation6 + $0x1], 0 }
   0x3   :  { %12 = vsyncpa [#allocation4], 0 }
   0x4   :  { %14 = vsyncpa [#allocation4 + $0x1], 0  ;;  %s795_s12 = smov 0   ;;  %s797_s13 = smov 0  }
   0x5   :  { %s799_s14 = smov 0   ;;  %s801_s15 = smov 0  }
   0x6   :  { %s803_s16 = smov 0   ;;  %s805_s17 = smov 0  }
   0x7 LB: > { %s492_s18 = sadd.s32 4294967295, %s761_s17   ;;  %s493_s19 = sadd.s32 4294967294, %s761_s17   ;;  %s761_s17 = sphi %s805_s17, %s20_s17   ;;  %s757_s16 = sphi %s803_s16, %s1049_s16   ;;  %s753_s15 = sphi %s801_s15, %s1048_s15   ;;  %s749_s14 = sphi %s799_s14, %s1047_s14   ;;  %s745_s13 = sphi %s797_s13, %s1046_s13   ;;  %s741_s12 = sphi %s795_s12, %s1045_s12  }
   0x8   : > { %p72_p0 = scmp.ne.s32.totalorder %s749_s14, %s745_s13  ;;  %p73_p1 = scmp.eq.s32.totalorder %s761_s17, 0 }
   0x9   : > { %p78_p2 = scmp.ne.s32.totalorder %s745_s13, %s741_s12  ;;  %p832_p3 = scmp.eq.s32.totalorder %s492_s18, 0 }
   0xa   : > { %p836_p4 = por %p73_p1, %p72_p0  ;;  %p130_p5 = scmp.eq.s32.totalorder %s492_s18, 1 }
   0xb   : > { %s1030_s20 = scalar_select %p832_p3, 1, 0 }
   0xc   : > { %p842_p6 = por %p832_p3, %p78_p2  ;;  %p136_p7 = scmp.eq.s32.totalorder %s493_s19, 1 }
   0xd   : > { %p846_p8 = por %p130_p5, %p72_p0  ;;  %p494_p9 = scmp.ge.s32.totalorder %s761_s17, 1 }
   0xe   : > { %s1032_s22 = scalar_select %p842_p6, 1, 0 }
   0xf   : > { %s1033_s23 = scalar_select %p846_p8, 1, 0 }
  0x10   : > { %p851_p10 = por %p136_p7, %p78_p2  ;;  %p143_p11 = scmp.lt.s32.totalorder %s761_s17, 3 }
  0x11   : > { %s763_s26 = smov [#allocation2]   ;;  %p543_p1 = scmp.lt.s32.totalorder %s761_s17, 2 }
  0x12   : > { %s1034_s24 = scalar_select %p851_p10, 1, 0 }
  0x13   : > { %p856_p12 = pnand %p494_p9, %p143_p11  ;;  %s158_s27 = sshll.u32 %s763_s26, 4  ;;  %s860_s27 = int_to_ptr.vmem [resolvable:$true] %s158_s27 }
  0x14   : > { %p874_p2 = pnand %p543_p1, %p836_p4  ;;  %s29_s30 = sadd.s32 1, %s757_s16 }
  0x15   : > { %s1035_s25 = scalar_select %p856_p12, 1, 0 }
  0x16   : > { %p530_p13 = pneg %p856_p12  ;;  %s617_s6 = scalar_lea.hbm %s1020_s0, 128 }
  0x17   : > { %s1037_s29 = scalar_select %p874_p2, 1, 0 }
  0x18   : > { %p868_p5 = pnand %p530_p13, %p832_p3  ;;  %p618_p7 = scmp.ne.s32.totalorder %s1020_s0, %s617_s6 }
  0x19   : > { %p624_p4 = scmp.lt.u32.totalorder %s617_s6, %s1020_s0 }
  0x1a   : > { %p619_p9 = pneg %p868_p5 }
  0x1c   : > { %p620_p11 = pnand %p619_p9, %p618_p7 }
  0x1e   : > { %p621_p13 = pneg %p620_p11 }
  0x20   : > { %p626_p1 = pnand %p624_p4, %p621_p13 }
  0x22   : > { %629 = shalt.err (!%p626_p1)
}
  0x23   : > { %s630_s11 = scalar_lea.vmem %s860_s27, 128  ;;  %p638_p6 = scmp.lt.s32.totalorder %s860_s27, %s860_s27 }
  0x24   : > { %p631_p0 = scmp.ne.s32.totalorder %s860_s27, %s630_s11  ;;  %p639_p3 = scmp.lt.s32.totalorder %s630_s11, %s630_s11 }
  0x26   : > { %p633_p10 = pnand %p631_p0, %p619_p9  ;;  %p640_p12 = por %p639_p3, %p638_p6 }
  0x28   : > { %p634_p8 = pneg %p633_p10 }
  0x2a   : > { %p641_p2 = pnand %p640_p12, %p634_p8 }
  0x2c   : > { %644 = shalt.err (!%p641_p2)
}
  0x2d   : > { %s764_s18 = smov 64   ;;  %s765_s19 = smov 4  }
  0x2e   : > { %533 = dma.hbm_to_vmem [thread:$0]  (!%p868_p5), %s1020_s0, 128, %s860_s27, [#allocation3], %s764_s18, %s764_s18, %s765_s19  }
  0x2f   : > { %p30_p10 = scmp.ge.s32.totalorder %s29_s30, 2  ;;  %s65_s4 = sadd.s32 1, %s749_s14 }
  0x30   : > { %s172_s5 = sand.u32 1, %s749_s14   ;;  %s520_s8 = sshll.u32 %s757_s16, 7 }
  0x31   : > { %s1051_s30 = smov (%p30_p10, %s29_s30), 0  ;;  %s497_s6 = sshll.u32 %s172_s5, 6 }
  0x32   : > { %s62_s7 = ssub.s32 %s757_s16, %s1051_s30  ;;  %s910_s28 = scalar_lea.hbm %s1021_s1, %s520_s8 }
  0x33   : > { %p63_p3 = scmp.eq.s32.totalorder %s62_s7, 0  ;;  %s176_s27 = scalar_lea.vmem [#allocation5], %s497_s6 }
  0x34   : > { %s183_s11 = sshll.u32 %s176_s27, 4  ;;  %s917_s19 = scalar_lea.sflag [#allocation6], %s172_s5  ;;  %s915_s11 = int_to_ptr.vmem [resolvable:$true] %s183_s11 }
  0x35   : > { %s913_s18 = scalar_select %p63_p3, %s749_s14, %s65_s4  }
  0x36   : > { %s645_s21 = scalar_lea.hbm %s910_s28, 1024  ;;  %p1038_p8 = scmp.ne.s32.totalorder %s1037_s29, 0 }
  0x37   : > { %p646_p6 = scmp.ne.s32.totalorder %s910_s28, %s645_s21  ;;  %s650_s8 = scalar_lea.hbm %s1021_s1, 2048 }
  0x38   : > { %p647_p12 = pneg %p1038_p8  ;;  %p651_p2 = scmp.lt.u32.totalorder %s910_s28, %s1021_s1 }
  0x39   : > { %p652_p7 = scmp.lt.u32.totalorder %s650_s8, %s645_s21  ;;  %p654_p11 = scmp.lt.u32.totalorder %s645_s21, %s910_s28 }
  0x3a   : > { %p648_p0 = pnand %p647_p12, %p646_p6 }
  0x3b   : > { %p653_p9 = por %p652_p7, %p651_p2 }
  0x3c   : > { %p649_p5 = pneg %p648_p0 }
  0x3d   : > { %p655_p13 = por %p654_p11, %p653_p9 }
  0x3f   : > { %p656_p4 = pnand %p655_p13, %p649_p5 }
  0x41   : > { %659 = shalt.err (!%p656_p4)
}
  0x42   : > { %s660_s4 = scalar_lea.vmem %s915_s11, 1024  ;;  %s766_s5 = smov [#allocation5]  }
  0x43   : > { %p661_p1 = scmp.ne.s32.totalorder %s915_s11, %s660_s4  ;;  %s665_s10 = sshll.u32 %s766_s5, 4  ;;  %s666_s10 = int_to_ptr.vmem [resolvable:$false] %s665_s10 }
  0x44   : > { %s667_s27 = scalar_lea.vmem %s666_s10, 2048  ;;  %p668_p6 = scmp.lt.s32.totalorder %s915_s11, %s666_s10 }
  0x45   : > { %p663_p10 = pnand %p661_p1, %p647_p12  ;;  %p669_p0 = scmp.lt.s32.totalorder %s667_s27, %s660_s4 }
  0x47   : > { %p664_p3 = pneg %p663_p10  ;;  %p670_p2 = por %p669_p0, %p668_p6 }
  0x49   : > { %p671_p7 = pnand %p670_p2, %p664_p3 }
  0x4b   : > { %674 = shalt.err (!%p671_p7)
}
  0x4c   : > { %s767_s21 = smov 256   ;;  %s768_s26 = smov 128  }
  0x4d   : > { %s769_s7 = smov 8   ;;  %p1039_p12 = scmp.ne.s32.totalorder %s1035_s25, 0 }
  0x4e   : > { %537 = dma.hbm_to_vmem [thread:$0]  (!%p1038_p8), %s910_s28, 1024, %s915_s11, %s917_s19, %s767_s21, %s768_s26, %s769_s7  }
  0x4f   : > { %203 = sbr.rel (%p1039_p12) target bundleno = 341 (0x155), region = 32  ;;  %p1040_p5 = scmp.ne.s32.totalorder (!%p1039_p12), %s1030_s20, 0 }
  0x56   : > { %728 = dma.done.wait (%p1040_p5), [#allocation3], 128  }
  0x57   : > { %730 = vsyncadd (%p1040_p5), [#allocation3], 4294967168  ;;  %s952_s8 = sand.u32 1, %s745_s13   ;;  %p1041_p9 = scmp.ne.s32.totalorder %s1032_s22, 0 }
  0x58   : > { %s502_s6 = sshll.u32 %s952_s8, 6  ;;  %s210_s9 = scalar_lea.sflag [#allocation6], %s952_s8 }
  0x59   : > { %s213_s4 = scalar_lea.vmem [#allocation5], %s502_s6 }
  0x5a   : > { %732 = dma.done.wait (%p1041_p9), %s210_s9, 1024  }
  0x5b   : > { %734 = vsyncadd (%p1041_p9), %s210_s9, 4294966272  ;;  %v770_v0 = vmov 0   ;;  %v604_v1 = vld [vmem:[%s213_s4 + $0x4] ss:$8 sps:$4 sm:$0xff]   ;;  %v606_v2 = vld [vmem:[%s213_s4] ss:$8 sps:$4 sm:$0xff]   ;;  %v262_v10 = vlaneseq }
  0x5c   : > { %353 = vmatprep.mubr.bf16.mxu0 %v770_v0  ;;  %321 = vmatprep.subr.bf16.mxu0 %v604_v1  ;;  %v607_v3 = vld [vmem:[%s213_s4 + $0x14] ss:$8 sps:$4 sm:$0xff]   ;;  %v609_v4 = vld [vmem:[%s213_s4 + $0x10] ss:$8 sps:$4 sm:$0xff]   ;;  %v610_v5 = vld [vmem:[%s213_s4 + $0x24] ss:$8 sps:$4 sm:$0xff]  }
  0x5d   : > { %322 = vmatpush1.bf16.msra.mxu0 %v606_v2  ;;  %v612_v6 = vld [vmem:[%s213_s4 + $0x20] ss:$8 sps:$4 sm:$0xff]   ;;  %v613_v7 = vld [vmem:[%s213_s4 + $0x34] ss:$8 sps:$4 sm:$0xff]   ;;  %v615_v8 = vld [vmem:[%s213_s4 + $0x30] ss:$8 sps:$4 sm:$0xff]  }
  0x5e   : > { %323 = vmatprep.subr.bf16.mxu0 %v607_v3  ;;  %v616_v9 = vld [vmem:[#allocation2] sm:$0xff]   ;;  %vm317_vm0 = vcmask 523264   ;;  %s504_s20 = sshll.u32 %s753_s15, 1  ;;  %v263_v11 = vshrl.u32 %v262_v10, 7  ;;  %s503_s28 = sshll.u32 %s952_s8, 5 }
  0x5f   : > { %p243_p8 = scmp.lt.s32.totalorder %s504_s20, 3  ;;  %s239_s11 = scalar_lea.vmem [#allocation7], %s503_s28 }
  0x60   : > { %v264_v12 = vsub.s32 0, %v263_v11  ;;  %v268_v14 = vsub.s32 1, %v263_v11  ;;  %s385_s19 = sshll.u32 %s239_s11, 4  ;;  %s521_s5 = sshll.u32 %s753_s15, 8  ;;  %s966_s19 = int_to_ptr.vmem [resolvable:$true] %s385_s19 }
  0x61   : > { %324 = vmatpush1.bf16.msra.mxu0 %v609_v4  ;;  %s1053_s20 = smov (!%p243_p8, %s504_s20), 3  ;;  %s971_s21 = scalar_lea.hbm %s1023_s3, %s521_s5 }
  0x62   : > { %325 = vmatprep.subr.bf16.mxu0 %v610_v5  ;;  %s245_s29 = scalar_lea.vmem %s1022_s2, %s1053_s20  ;;  %s369_s15 = scalar_lea.sflag [#allocation4], %s952_s8 }
  0x63   : > { %v260_v13 = vld [vmem:[%s245_s29] sm:$0x3]  ;;  %s675_s26 = scalar_lea.vmem %s966_s19, 512  ;;  %p1042_p13 = scmp.ne.s32.totalorder %s1033_s23, 0 }
  0x64   : > { %v265_v15 = vrot.slane %v260_v13, %v264_v12  ;;  %v269_v16 = vrot.slane %v260_v13, %v268_v14  ;;  %p676_p11 = scmp.ne.s32.totalorder %s966_s19, %s675_s26  ;;  %s771_s7 = smov [#allocation7]  }
  0x65   : > { %326 = vmatpush1.bf16.msra.mxu0 %v612_v6  ;;  %s679_s6 = sshll.u32 %s771_s7, 4  ;;  %s680_s6 = int_to_ptr.vmem [resolvable:$false] %s679_s6 }
  0x66   : > { %327 = vmatprep.subr.bf16.mxu0 %v613_v7  ;;  %p677_p4 = pnand %p676_p11, %p1042_p13  ;;  %s681_s9 = scalar_lea.vmem %s680_s6, 1024 }
  0x67   : > { %p682_p10 = scmp.lt.s32.totalorder %s966_s19, %s680_s6  ;;  %p683_p3 = scmp.lt.s32.totalorder %s681_s9, %s675_s26 }
  0x68   : > { %p678_p1 = pneg %p677_p4 }
  0x69   : > { %328 = vmatpush1.bf16.msra.mxu0 %v615_v8  ;;  %p684_p6 = por %p683_p3, %p682_p10 }
  0x6b   : > { %p685_p0 = pnand %p684_p6, %p678_p1 }
  0x6c   : > { %514 = vmatmul.mubr.msk.bf16.vlgmr.msra.gmra.mrb[0].mxu0 %vm317_vm0, %v616_v9 }
 0x13f   : > { %v355_v17 = vpop.f32.mrb[0].mxu0 }
 0x140   : > { %v356_v18 = vadd.f32 %v355_v17, %v265_v15  ;;  %v357_v19 = vpop.f32.mrb[1].mxu0 }
 0x141   : > { %v358_v20 = vadd.f32 %v357_v19, %v269_v16  ;;  %v359_v21 = vpop.f32.mrb[2].mxu0 }
 0x142   : > { %364 = vst [vmem:[%s239_s11] sm:$0xff] %v356_v18  ;;  %v360_v22 = vadd.f32 %v359_v21, %v265_v15  ;;  %v361_v23 = vpop.f32.mrb[3].mxu0 }
 0x143   : > { %365 = vst [vmem:[%s239_s11 + $0x8] sm:$0xff] %v358_v20  ;;  %v362_v24 = vadd.f32 %v361_v23, %v269_v16 }
 0x144   : > { %366 = vst [vmem:[%s239_s11 + $0x10] sm:$0xff] %v360_v22 }
 0x145   : > { %367 = vst [vmem:[%s239_s11 + $0x18] sm:$0xff] %v362_v24 }
 0x146   : > { %688 = shalt.err (!%p685_p0)
}
 0x147   : > { %s689_s4 = scalar_lea.hbm %s971_s21, 512  ;;  %s693_s25 = scalar_lea.hbm %s1023_s3, 1024 }
 0x148   : > { %p690_p2 = scmp.ne.s32.totalorder %s971_s21, %s689_s4  ;;  %p694_p5 = scmp.lt.u32.totalorder %s971_s21, %s1023_s3 }
 0x149   : > { %p695_p9 = scmp.lt.u32.totalorder %s693_s25, %s689_s4  ;;  %p697_p11 = scmp.lt.u32.totalorder %s689_s4, %s971_s21 }
 0x14a   : > { %p691_p7 = pnand %p690_p2, %p1042_p13 }
 0x14b   : > { %p696_p8 = por %p695_p9, %p694_p5 }
 0x14c   : > { %p692_p12 = pneg %p691_p7 }
 0x14d   : > { %p698_p4 = por %p697_p11, %p696_p8 }
 0x14f   : > { %p699_p1 = pnand %p698_p4, %p692_p12 }
 0x151   : > { %702 = shalt.err (!%p699_p1)
}
 0x152   : > { %s772_s11 = smov 256   ;;  %s773_s5 = smov 512  }
 0x153   : > { %s774_s10 = smov 16  }
 0x154   : > { %528 = dma.vmem_to_hbm [thread:$0]  (%p1042_p13), %s966_s19, 512, %s971_s21, %s369_s15, %s772_s11, %s773_s5, %s774_s10  }
 0x155 PF: > { %s400_s27 = sand.u32 1, %s741_s12   ;;  %p1043_p10 = scmp.ne.s32.totalorder %s1034_s24, 0 }
 0x156   : > { %p1044_p3 = scmp.ge.s32.totalorder %s761_s17, 2  ;;  %s401_s26 = scalar_lea.sflag [#allocation4], %s400_s27 }
 0x158   : > { %p539_p6 = pnand %p1044_p3, %p1043_p10 }
 0x15a   : > { %736 = dma.done.wait (!%p539_p6), %s401_s26, 512  }
 0x15b   : > { %738 = vsyncadd (!%p539_p6), %s401_s26, 4294966784  ;;  %s20_s17 = sadd.s32 1, %s761_s17   ;;  %s1045_s12 = smov %s745_s13 }
 0x15c   : > { %p17_p0 = scmp.ge.s32.totalorder %s20_s17, 4   ;;  %s1046_s13 = smov %s749_s14 }
 0x15d   : > { %s1047_s14 = smov %s913_s18  ;;  %s1048_s15 = smov %s757_s16 }
 0x15e   : > { %s1049_s16 = smov %s1051_s30  ;;  %19 = sbr.rel (!%p17_p0) target bundleno = 7 (0x7), region = 86 }
 0x165   :  { %406 = vsyncpa [#allocation3], 1 }
 0x166   :  { %408 = vsyncpa [#allocation3 + $0x1], 1 }
 0x167   :  { %409 = vsyncpa [#allocation6], 1 }
 0x168   :  { %411 = vsyncpa [#allocation6 + $0x1], 1 }
 0x169   :  { %412 = vsyncpa [#allocation4], 1 }
 0x16a   :  { %414 = vsyncpa [#allocation4 + $0x1], 1 }

</bundles_post_ra>
